<compile_context>
chip_gen: v6e
topology: v6e:2x2x1
jax: 0.10.0
libtpu: 0.0.40
codegen_flags: <defaults>
</compile_context>

<pallas_src>
import functools
import math

import jax
import jax.numpy as jnp
from jax.experimental import pallas as pl
from jax.experimental.pallas import tpu as pltpu

EPS = 1e-5
_MXU_DTYPE = jnp.bfloat16          # matmul operand dtype (accumulation stays f32)


# --------------------------------------------------------------------------- #
# Explicit, tile-derived scoped-VMEM budget
# --------------------------------------------------------------------------- #
def _padded_block_bytes(shape, dtype):
    s = list(shape)
    s[-1] = -(-s[-1] // 128) * 128
    if len(s) >= 2:
        s[-2] = -(-s[-2] // 16) * 16       # 16 also covers bf16 sublane packing
    return math.prod(s) * jnp.dtype(dtype).itemsize


def _vmem_limit_bytes(blocks):
    total = sum(_padded_block_bytes(s, d) for s, d in blocks)
    budget = 2 * total + (4 << 20)         # x2: double-buffered pipeline
    return int(min(max(budget, 16 << 20), 48 << 20))   # stay under v7x 64 MiB


# --------------------------------------------------------------------------- #
# Pallas kernels
# --------------------------------------------------------------------------- #
def _channel_stats_kernel(x_ref, stats_ref, *, total_rows, tile_rows):
    """Single-pass per-channel sum / sum-of-squares, accumulated over row tiles."""
    @pl.when(pl.program_id(0) == 0)
    def _init():
        stats_ref[...] = jnp.zeros_like(stats_ref)

    x = x_ref[...].astype(jnp.float32)
    if total_rows % tile_rows != 0:
        # Last (ragged) tile: mask rows that fall past the end of the array.
        row = (pl.program_id(0) * tile_rows
               + jax.lax.broadcasted_iota(jnp.int32, x.shape, 0))
        x = jnp.where(row < total_rows, x, 0.0)
    stats_ref[...] += jnp.concatenate(
        [jnp.sum(x, axis=0, keepdims=True),
         jnp.sum(x * x, axis=0, keepdims=True)], axis=0)


def _accum_channel_stats(stats_ref, y):
    """stats_ref (2, C): row 0 += sum(y), row 1 += sum(y*y) over rows of y."""
    stats_ref[...] += jnp.concatenate(
        [jnp.sum(y, axis=0, keepdims=True),
         jnp.sum(y * y, axis=0, keepdims=True)], axis=0)


def _shift_rows(x, amount):
    """Zero-filled shift along axis 0: result[r] = x[r + amount] (0 outside)."""
    if amount == 0:
        return x
    n = x.shape[0]
    pad = jnp.zeros((abs(amount),) + x.shape[1:], x.dtype)
    if amount > 0:
        return jnp.concatenate([x[amount:], pad], axis=0)
    return jnp.concatenate([pad, x[:n + amount]], axis=0)


def _conv3x3(act_hwc, w_ref, H, W, cout):
    """3x3 'same' cross-correlation of an (H, W, Cin) activation.

    Taps are zero-filled shifts of the flattened (H*W, Cin) activation; the row
    (H) boundary is handled by the zero fill, the column (W) boundary by zeroing
    the source column that would wrap across rows.  Taps feed the MXU as bf16
    with float32 accumulation.  w_ref has shape (9, Cin, Cout), k = kh*3 + kw.
    """
    cin = act_hwc.shape[-1]
    hw = H * W
    col = jax.lax.broadcasted_iota(jnp.int32, (H, W, 1), 1)
    act_by_dw = {
        -1: jnp.where(col == (W - 1), 0.0, act_hwc).reshape(hw, cin),
        0: act_hwc.reshape(hw, cin),
        1: jnp.where(col == 0, 0.0, act_hwc).reshape(hw, cin),
    }
    acc = jnp.zeros((hw, cout), jnp.float32)
    for kh in range(3):
        for kw in range(3):
            dh, dw = kh - 1, kw - 1
            tap = _shift_rows(act_by_dw[dw], dh * W + dw)
            acc = acc + jnp.dot(tap.astype(_MXU_DTYPE), w_ref[kh * 3 + kw],
                                preferred_element_type=jnp.float32)
    return acc


def _stage1_kernel(*refs, H, W, has_downsample):
    """Fused stage 1 (one image per grid step):
         out1 = conv3x3(relu(x * s1 + b1))
         ds   = conv1x1(x)                                [if has_downsample]
       plus resident per-channel (sum, sum_sq) accumulators for out1 (and ds),
       which are later folded into BN2 (and the downsample BN)."""
    if has_downsample:
        (x_ref, s1_ref, b1_ref, w1_ref, wd_ref,
         out1_ref, ds_ref, st1_ref, std_ref) = refs
    else:
        x_ref, s1_ref, b1_ref, w1_ref, out1_ref, st1_ref = refs
        wd_ref = ds_ref = std_ref = None

    @pl.when(pl.program_id(0) == 0)
    def _init():
        st1_ref[...] = jnp.zeros_like(st1_ref)
        if has_downsample:
            std_ref[...] = jnp.zeros_like(std_ref)

    cin = x_ref.shape[-1]
    cout = out1_ref.shape[-1]
    hw = H * W

    x_img = x_ref[0]                                            # (H, W, Cin) f32
    act = jnp.maximum(x_img * s1_ref[...] + b1_ref[...], 0.0)   # BN1 + ReLU

    out1 = _conv3x3(act, w1_ref, H, W, cout)                    # (H*W, Cout) f32
    out1_ref[0] = out1.reshape(H, W, cout)
    _accum_channel_stats(st1_ref, out1)

    if has_downsample:
        xf = x_img.reshape(hw, cin).astype(_MXU_DTYPE)
        ds = jnp.dot(xf, wd_ref[...], preferred_element_type=jnp.float32)
        ds_ref[0] = ds.reshape(H, W, cout)
        _accum_channel_stats(std_ref, ds)


def _stage2_kernel(*refs, H, W, add_residual):
    """Fused stage 2: out = conv3x3(relu(out1 * s2 + b2))  [+ res * sd + bd]."""
    if add_residual:
        (out1_ref, s2_ref, b2_ref, w2_ref,
         res_ref, sd_ref, bd_ref, o_ref) = refs
    else:
        out1_ref, s2_ref, b2_ref, w2_ref, o_ref = refs
        res_ref = sd_ref = bd_ref = None

    cout = o_ref.shape[-1]
    hw = H * W
    act = jnp.maximum(out1_ref[0] * s2_ref[...] + b2_ref[...], 0.0)
    out = _conv3x3(act, w2_ref, H, W, cout)                     # (H*W, Cout) f32
    if add_residual:
        res = res_ref[0].reshape(hw, cout)
        out = out + res * sd_ref[...] + bd_ref[...]             # folded BN of residual
    o_ref[0] = out.reshape(H, W, cout).astype(o_ref.dtype)


# --------------------------------------------------------------------------- #
# pallas_call wrappers
# --------------------------------------------------------------------------- #
def channel_stats(x_nhwc, *, tile_rows=1024):
    """Per-channel (sum, sum_sq) over N*H*W, streamed in double-buffered row tiles."""
    N, H, W, C = x_nhwc.shape
    M = N * H * W
    xf = x_nhwc.reshape(M, C)
    tr = min(tile_rows, M)
    if tr < M:
        tr = max(8, (tr // 8) * 8)
    kernel = functools.partial(_channel_stats_kernel, total_rows=M, tile_rows=tr)
    return pl.pallas_call(
        kernel,
        out_shape=jax.ShapeDtypeStruct((2, C), jnp.float32),
        grid_spec=pltpu.PrefetchScalarGridSpec(
            num_scalar_prefetch=0,
            grid=(pl.cdiv(M, tr),),
            in_specs=[pl.BlockSpec((tr, C), lambda i: (i, 0))],
            out_specs=pl.BlockSpec((2, C), lambda i: (0, 0)),
        ),
        compiler_params=pltpu.CompilerParams(
            dimension_semantics=("arbitrary",),      # resident accumulator output
            vmem_limit_bytes=_vmem_limit_bytes([((tr, C), jnp.float32),
                                                ((2, C), jnp.float32)]),
        ),
    )(xf)


def fused_stage1(x_nhwc, s1, b1, w1_9io, wd_io=None):
    N, H, W, Cin = x_nhwc.shape
    Cout = w1_9io.shape[-1]
    has_ds = wd_io is not None

    in_specs = [
        pl.BlockSpec((1, H, W, Cin), lambda n: (n, 0, 0, 0)),
        pl.BlockSpec((1, Cin), lambda n: (0, 0)),
        pl.BlockSpec((1, Cin), lambda n: (0, 0)),
        pl.BlockSpec((9, Cin, Cout), lambda n: (0, 0, 0)),
    ]
    args = [x_nhwc, s1, b1, w1_9io]
    blocks = [((1, H, W, Cin), jnp.float32), ((1, Cin), jnp.float32),
              ((1, Cin), jnp.float32), ((9, Cin, Cout), w1_9io.dtype)]
    if has_ds:
        in_specs.append(pl.BlockSpec((Cin, Cout), lambda n: (0, 0)))
        args.append(wd_io)
        blocks.append(((Cin, Cout), wd_io.dtype))

    out_shape = [jax.ShapeDtypeStruct((N, H, W, Cout), jnp.float32)]
    out_specs = [pl.BlockSpec((1, H, W, Cout), lambda n: (n, 0, 0, 0))]
    blocks.append(((1, H, W, Cout), jnp.float32))
    if has_ds:
        out_shape.append(jax.ShapeDtypeStruct((N, H, W, Cout), jnp.float32))
        out_specs.append(pl.BlockSpec((1, H, W, Cout), lambda n: (n, 0, 0, 0)))
        blocks.append(((1, H, W, Cout), jnp.float32))
    out_shape.append(jax.ShapeDtypeStruct((2, Cout), jnp.float32))
    out_specs.append(pl.BlockSpec((2, Cout), lambda n: (0, 0)))
    blocks.append(((2, Cout), jnp.float32))
    if has_ds:
        out_shape.append(jax.ShapeDtypeStruct((2, Cout), jnp.float32))
        out_specs.append(pl.BlockSpec((2, Cout), lambda n: (0, 0)))
        blocks.append(((2, Cout), jnp.float32))

    kernel = functools.partial(_stage1_kernel, H=H, W=W, has_downsample=has_ds)
    return pl.pallas_call(
        kernel,
        out_shape=tuple(out_shape),
        grid_spec=pltpu.PrefetchScalarGridSpec(
            num_scalar_prefetch=0,
            grid=(N,),
            in_specs=in_specs,
            out_specs=tuple(out_specs),
        ),
        compiler_params=pltpu.CompilerParams(
            # Stats accumulators are resident across the batch axis, so it must be
            # sequential; parallel-vs-arbitrary has near-zero measured cost and the
            # fusion removes several full-tensor HBM passes.
            dimension_semantics=("arbitrary",),
            vmem_limit_bytes=_vmem_limit_bytes(blocks),
        ),
    )(*args)


def fused_stage2(out1, s2, b2, w2_9io, res=None, sd=None, bd=None):
    N, H, W, C1 = out1.shape
    Cout = w2_9io.shape[-1]
    add_res = res is not None

    in_specs = [
        pl.BlockSpec((1, H, W, C1), lambda n: (n, 0, 0, 0)),
        pl.BlockSpec((1, C1), lambda n: (0, 0)),
        pl.BlockSpec((1, C1), lambda n: (0, 0)),
        pl.BlockSpec((9, C1, Cout), lambda n: (0, 0, 0)),
    ]
    args = [out1, s2, b2, w2_9io]
    blocks = [((1, H, W, C1), jnp.float32), ((1, C1), jnp.float32),
              ((1, C1), jnp.float32), ((9, C1, Cout), w2_9io.dtype)]
    if add_res:
        in_specs += [
            pl.BlockSpec((1, H, W, Cout), lambda n: (n, 0, 0, 0)),
            pl.BlockSpec((1, Cout), lambda n: (0, 0)),
            pl.BlockSpec((1, Cout), lambda n: (0, 0)),
        ]
        args += [res, sd, bd]
        blocks += [((1, H, W, Cout), jnp.float32), ((1, Cout), jnp.float32),
                   ((1, Cout), jnp.float32)]
    blocks.append(((1, H, W, Cout), jnp.float32))

    kernel = functools.partial(_stage2_kernel, H=H, W=W, add_residual=add_res)
    return pl.pallas_call(
        kernel,
        out_shape=jax.ShapeDtypeStruct((N, H, W, Cout), jnp.float32),
        grid_spec=pltpu.PrefetchScalarGridSpec(
            num_scalar_prefetch=0,
            grid=(N,),
            in_specs=in_specs,
            out_specs=pl.BlockSpec((1, H, W, Cout), lambda n: (n, 0, 0, 0)),
        ),
        compiler_params=pltpu.CompilerParams(
            dimension_semantics=("parallel",),
            vmem_limit_bytes=_vmem_limit_bytes(blocks),
        ),
    )(*args)


# --------------------------------------------------------------------------- #
# ResUnetBlock forward
# --------------------------------------------------------------------------- #
def _fold_bn(stats, gamma, beta, count):
    """Fold training-mode BN (batch mean, biased variance) into (scale, bias)."""
    mean = stats[0] / count
    var = jnp.maximum(stats[1] / count - mean * mean, 0.0)
    scale = gamma / jnp.sqrt(var + EPS)
    bias = beta - mean * scale
    c = scale.shape[0]
    return scale.reshape(1, c).astype(jnp.float32), bias.reshape(1, c).astype(jnp.float32)


def resunet_block_forward(x_nchw, params, *, stride=1, residual=True):
    # TODO(synk): stride > 1 (strided conv3x3 / strided 1x1 downsample) not implemented.
    assert stride == 1
    x = jnp.transpose(x_nchw, (0, 2, 3, 1)).astype(jnp.float32)   # NCHW -> NHWC
    N, H, W, Cin = x.shape
    w1 = params["w1_9io"]                                         # (9, Cin, Cout) bf16
    w2 = params["w2_9io"]                                         # (9, Cout, Cout) bf16
    Cout = w1.shape[-1]
    count = float(N * H * W)
    has_downsample = (Cin != Cout) or (stride != 1)

    # BN1 (training-mode batch stats of x) folded into (scale, bias)
    s1, b1 = _fold_bn(channel_stats(x), params["g1"], params["b1"], count)

    # Stage 1: conv1 + (optional) 1x1 downsample + stats needed for BN2 / BN_d
    if residual and has_downsample:
        out1, ds, st1, std = fused_stage1(x, s1, b1, w1, params["wd_io"])
        sd, bd = _fold_bn(std, params["gd"], params["bd"], count)
    else:
        out1, st1 = fused_stage1(x, s1, b1, w1)
        # Identity residual (inplanes == planes): untested branch, kept for parity.
        ds = x
        sd = jnp.ones((1, Cout), jnp.float32)
        bd = jnp.zeros((1, Cout), jnp.float32)
    s2, b2 = _fold_bn(st1, params["g2"], params["b2"], count)

    # Stage 2: conv2 + fused residual add (with folded downsample BN)
    if residual:
        out = fused_stage2(out1, s2, b2, w2, ds, sd, bd)
    else:
        out = fused_stage2(out1, s2, b2, w2)
    return jnp.transpose(out, (0, 3, 1, 2))                       # NHWC -> NCHW


# --------------------------------------------------------------------------- #
# Pure-JAX reference (NCHW, mirrors the PyTorch forward)
# --------------------------------------------------------------------------- #
def reference_forward(x_nchw, params, *, residual=True):
    x = x_nchw.astype(jnp.float32)

    def bn_train(y, g, b):
        mean = jnp.mean(y, axis=(0, 2, 3), keepdims=True)
        var = jnp.mean((y - mean) ** 2, axis=(0, 2, 3), keepdims=True)
        return (y - mean) / jnp.sqrt(var + EPS) * g.reshape(1, -1, 1, 1) + b.reshape(1, -1, 1, 1)

    def conv(y, w_oihw, pad=1):
        return jax.lax.conv_general_dilated(
            y, w_oihw, (1, 1), [(pad, pad), (pad, pad)],
            dimension_numbers=("NCHW", "OIHW", "NCHW"))

    out = jnp.maximum(bn_train(x, params["g1"], params["b1"]), 0.0)
    out = conv(out, params["w1_oihw"])
    out = jnp.maximum(bn_train(out, params["g2"], params["b2"]), 0.0)
    out = conv(out, params["w2_oihw"])
    if residual:
        r = conv(x, params["wd_oihw"], pad=0)
        r = bn_train(r, params["gd"], params["bd"])
        out = out + r
    return out


# --------------------------------------------------------------------------- #
# Main
# --------------------------------------------------------------------------- #
if __name__ == "__main__":
    N, inplanes, planes, H, W = 2, 4, 8, 16, 16

    keys = jax.random.split(jax.random.PRNGKey(0), 10)
    w1_oihw = 0.1 * jax.random.normal(keys[0], (planes, inplanes, 3, 3), jnp.float32)
    w2_oihw = 0.1 * jax.random.normal(keys[1], (planes, planes, 3, 3), jnp.float32)
    wd_oihw = 0.1 * jax.random.normal(keys[2], (planes, inplanes, 1, 1), jnp.float32)

    params = {
        # MXU-ready layouts for the Pallas kernels (bf16 operands, f32 accumulation)
        "w1_9io": jnp.transpose(w1_oihw, (2, 3, 1, 0)).reshape(9, inplanes, planes).astype(jnp.bfloat16),
        "w2_9io": jnp.transpose(w2_oihw, (2, 3, 1, 0)).reshape(9, planes, planes).astype(jnp.bfloat16),
        "wd_io": jnp.transpose(wd_oihw[:, :, 0, 0], (1, 0)).astype(jnp.bfloat16),
        # f32 OIHW copies for the pure-JAX reference
        "w1_oihw": w1_oihw, "w2_oihw": w2_oihw, "wd_oihw": wd_oihw,
        "g1": 1.0 + 0.1 * jax.random.normal(keys[3], (inplanes,), jnp.float32),
        "b1": 0.1 * jax.random.normal(keys[4], (inplanes,), jnp.float32),
        "g2": 1.0 + 0.1 * jax.random.normal(keys[5], (planes,), jnp.float32),
        "b2": 0.1 * jax.random.normal(keys[6], (planes,), jnp.float32),
        "gd": 1.0 + 0.1 * jax.random.normal(keys[7], (planes,), jnp.float32),
        "bd": 0.1 * jax.random.normal(keys[8], (planes,), jnp.float32),
    }

    x = jax.random.normal(keys[9], (N, inplanes, H, W), jnp.float32)

    out = jax.block_until_ready(resunet_block_forward(x, params, stride=1, residual=True))
    ref = jax.block_until_ready(reference_forward(x, params, residual=True))

    assert out.shape == (N, planes, H, W)
    max_err = float(jnp.max(jnp.abs(out - ref)))
    assert jnp.allclose(out, ref, rtol=2e-2, atol=2e-2), f"max_abs_err={max_err}"

    print("KERNEL_OK")
</pallas_src>

<mosaic_0001>
module attributes {stable_mosaic.version = 11 : i64} {
  func.func @_channel_stats_kernel(%arg0: i32, %arg1: memref<512x4xf32, #tpu.memory_space<vmem>>, %arg2: memref<2x4xf32, #tpu.memory_space<vmem>>) attributes {dimension_semantics = [#tpu.dimension_semantics<arbitrary>], iteration_bounds = array<i64: 1>, scalar_prefetch = 0 : i64, scratch_operands = 0 : i64, tpu.core_type = #tpu.core_type<tc>, window_params = [{transform_indices = @transform_0, window_bounds = array<i64: 512, 4>}, {pipeline_mode = #tpu.pipeline_mode<synchronous>, transform_indices = @transform_1, window_bounds = array<i64: 2, 4>}]} {
    %c0_i32 = arith.constant 0 : i32
    %0 = arith.cmpi eq, %arg0, %c0_i32 : i32
    %1 = arith.extui %0 : i1 to i32
    %c0_i32_0 = arith.constant 0 : i32
    %2 = arith.cmpi ne, %1, %c0_i32_0 : i32
    scf.if %2 {
      %cst_7 = arith.constant 0.000000e+00 : f32
      %13 = vector.broadcast %cst_7 : f32 to vector<2x4xf32>
      %c0_8 = arith.constant 0 : index
      %c0_9 = arith.constant 0 : index
      %14 = vector.load %arg2[%c0_8, %c0_9] : memref<2x4xf32, #tpu.memory_space<vmem>>, vector<2x4xf32>
      tpu.vector_store %arg2[%c0_8, %c0_9], %13 {strides = array<i32>} : memref<2x4xf32, #tpu.memory_space<vmem>>, vector<2x4xf32>,
    } else {
    }
    %c0 = arith.constant 0 : index
    %c0_1 = arith.constant 0 : index
    %3 = vector.load %arg1[%c0, %c0_1] : memref<512x4xf32, #tpu.memory_space<vmem>>, vector<512x4xf32>
    %c0_2 = arith.constant 0 : index
    %c0_3 = arith.constant 0 : index
    %4 = vector.load %arg2[%c0_2, %c0_3] : memref<2x4xf32, #tpu.memory_space<vmem>>, vector<2x4xf32>
    %cst = arith.constant dense<0.000000e+00> : vector<4xf32>
    %5 = vector.multi_reduction <add>, %3, %cst [0] : vector<512x4xf32> to vector<4xf32>
    %6 = vector.shape_cast %5 : vector<4xf32> to vector<1x4xf32>
    %7 = arith.mulf %3, %3 : vector<512x4xf32>
    %cst_4 = arith.constant dense<0.000000e+00> : vector<4xf32>
    %8 = vector.multi_reduction <add>, %7, %cst_4 [0] : vector<512x4xf32> to vector<4xf32>
    %9 = vector.shape_cast %8 : vector<4xf32> to vector<1x4xf32>
    %10 = tpu.concatenate %6, %9 in 0 : vector<1x4xf32>, vector<1x4xf32> -> vector<2x4xf32>
    %11 = arith.addf %4, %10 : vector<2x4xf32>
    %c0_5 = arith.constant 0 : index
    %c0_6 = arith.constant 0 : index
    %12 = vector.load %arg2[%c0_5, %c0_6] : memref<2x4xf32, #tpu.memory_space<vmem>>, vector<2x4xf32>
    tpu.vector_store %arg2[%c0_5, %c0_6], %11 {strides = array<i32>} : memref<2x4xf32, #tpu.memory_space<vmem>>, vector<2x4xf32>,
    return
  }
  func.func @transform_0(%arg0: i32) -> (i32, i32) {
    %c0_i32 = arith.constant 0 : i32
    %c0_i32_0 = arith.constant 0 : i32
    return %arg0, %c0_i32 : i32, i32
  }
  func.func @transform_1(%arg0: i32) -> (i32, i32) {
    %c0_i32 = arith.constant 0 : i32
    %c0_i32_0 = arith.constant 0 : i32
    %c0_i32_1 = arith.constant 0 : i32
    return %c0_i32, %c0_i32_0 : i32, i32
  }
}

</mosaic_0001>

<bundles_post_ra>
// kernel: tpu_custom_call.1
= control target key start
LH: loop header
LB: loop body
LE: loop exit
PB: predicated region body
PF: predicated region fallthrough
CT: control target
= control target key end

     0   :  { %6 = vsyncpa [#allocation3], 0  ;;  %vm13_vm0 = vcmask 25600   ;;  %v454_v0 = vmov 0.0   ;;  %vm80_vm1 = vcmask 31744   ;;  %vm411_vm2 = vcmask 1040384   ;;  %s1036_s0 = inlined_call_operand.vmem [shape: f32[512,4], index: 0, kind: input, shape index: {}]   ;;  %s1037_s1 = inlined_call_operand.hbm [shape: f32[2,4], index: 1, kind: output, shape index: {}]  }
   0x1   :  { %14 = vst.msk [vmem:[#allocation2] sm:$0x3] %vm13_vm0, %v454_v0  ;;  %v15_v1 = vld [vmem:[%s1036_s0] sm:$0xff]  ;;  %v16_v2 = vld [vmem:[%s1036_s0 + $0x8] sm:$0xff]  ;;  %v17_v3 = vld [vmem:[%s1036_s0 + $0x10] sm:$0xff] }
   0x2   :  { %v81_v4 = vsel %vm80_vm1, %v15_v1, 0.0  ;;  %v82_v5 = vsel %vm80_vm1, %v16_v2, 0.0  ;;  %v84_v6 = vsel %vm80_vm1, %v17_v3, 0.0  ;;  %v18_v7 = vld [vmem:[%s1036_s0 + $0x18] sm:$0xff]  ;;  %v19_v10 = vld [vmem:[%s1036_s0 + $0x20] sm:$0xff]  ;;  %v20_v13 = vld [vmem:[%s1036_s0 + $0x28] sm:$0xff]  ;;  %v214_v55 = vmul.f32 %v15_v1, %v15_v1 }
   0x3   :  { %v83_v8 = vadd.f32 %v82_v5, %v81_v4  ;;  %v86_v9 = vsel %vm80_vm1, %v18_v7, 0.0  ;;  %v88_v12 = vsel %vm80_vm1, %v19_v10, 0.0  ;;  %v90_v15 = vsel %vm80_vm1, %v20_v13, 0.0  ;;  %v494_v16 = vld [vmem:[%s1036_s0 + $0x30] sm:$0xff]  ;;  %v501_v19 = vld [vmem:[%s1036_s0 + $0x38] sm:$0xff]  ;;  %v508_v22 = vld [vmem:[%s1036_s0 + $0x40] sm:$0xff] }
   0x4   :  { %v92_v18 = vsel %vm80_vm1, %v494_v16, 0.0  ;;  %v94_v21 = vsel %vm80_vm1, %v501_v19, 0.0  ;;  %v96_v24 = vsel %vm80_vm1, %v508_v22, 0.0  ;;  %v515_v25 = vld [vmem:[%s1036_s0 + $0x48] sm:$0xff]  ;;  %v522_v28 = vld [vmem:[%s1036_s0 + $0x50] sm:$0xff]  ;;  %v529_v31 = vld [vmem:[%s1036_s0 + $0x58] sm:$0xff]  ;;  %v215_v56 = vmul.f32 %v16_v2, %v16_v2 }
   0x5   :  { %v85_v11 = vadd.f32 %v84_v6, %v83_v8  ;;  %v98_v27 = vsel %vm80_vm1, %v515_v25, 0.0  ;;  %v100_v30 = vsel %vm80_vm1, %v522_v28, 0.0  ;;  %v102_v33 = vsel %vm80_vm1, %v529_v31, 0.0  ;;  %v536_v34 = vld [vmem:[%s1036_s0 + $0x60] sm:$0xff]  ;;  %v543_v37 = vld [vmem:[%s1036_s0 + $0x68] sm:$0xff]  ;;  %v550_v40 = vld [vmem:[%s1036_s0 + $0x70] sm:$0xff] }
   0x6   :  { %v104_v36 = vsel %vm80_vm1, %v536_v34, 0.0  ;;  %v106_v39 = vsel %vm80_vm1, %v543_v37, 0.0  ;;  %v108_v42 = vsel %vm80_vm1, %v550_v40, 0.0  ;;  %v557_v43 = vld [vmem:[%s1036_s0 + $0x78] sm:$0xff]  ;;  %v564_v46 = vld [vmem:[%s1036_s0 + $0x80] sm:$0xff]  ;;  %v571_v49 = vld [vmem:[%s1036_s0 + $0x88] sm:$0xff]  ;;  %v216_v57 = vmul.f32 %v17_v3, %v17_v3 }
   0x7   :  { %v87_v14 = vadd.f32 %v86_v9, %v85_v11  ;;  %v110_v45 = vsel %vm80_vm1, %v557_v43, 0.0  ;;  %v112_v48 = vsel %vm80_vm1, %v564_v46, 0.0  ;;  %v114_v51 = vsel %vm80_vm1, %v571_v49, 0.0  ;;  %v578_v52 = vld [vmem:[%s1036_s0 + $0x90] sm:$0xff]  ;;  %v585_v58 = vld [vmem:[%s1036_s0 + $0x98] sm:$0xff]  ;;  %v592_v62 = vld [vmem:[%s1036_s0 + $0xa0] sm:$0xff] }
   0x8   :  { %v116_v54 = vsel %vm80_vm1, %v578_v52, 0.0  ;;  %v118_v60 = vsel %vm80_vm1, %v585_v58, 0.0  ;;  %v217_v61 = vmul.f32 %v18_v7, %v18_v7  ;;  %v218_v0 = vmul.f32 %v19_v10, %v19_v10  ;;  %v602_v5 = vld [vmem:[%s1036_s0 + $0xa8] sm:$0xff]  ;;  %v610_v11 = vld [vmem:[%s1036_s0 + $0xb0] sm:$0xff] }
   0x9   :  { %v89_v17 = vadd.f32 %v88_v12, %v87_v14  ;;  %v120_v1 = vsel %vm80_vm1, %v592_v62, 0.0  ;;  %v278_v2 = vsel %vm80_vm1, %v214_v55, 0.0  ;;  %v279_v3 = vsel %vm80_vm1, %v215_v56, 0.0 }
   0xa   :  { %v281_v4 = vsel %vm80_vm1, %v216_v57, 0.0  ;;  %v280_v7 = vadd.f32 %v279_v3, %v278_v2  ;;  %v122_v8 = vsel %vm80_vm1, %v602_v5, 0.0  ;;  %v219_v9 = vmul.f32 %v20_v13, %v20_v13  ;;  %v620_v13 = vld [vmem:[%s1036_s0 + $0xb8] sm:$0xff] }
   0xb   :  { %v91_v20 = vadd.f32 %v90_v15, %v89_v17  ;;  %v283_v10 = vsel %vm80_vm1, %v217_v61, 0.0  ;;  %v124_v15 = vsel %vm80_vm1, %v610_v11, 0.0  ;;  %v220_v17 = vmul.f32 %v494_v16, %v494_v16  ;;  %v630_v16 = vld [vmem:[%s1036_s0 + $0xc0] sm:$0xff] }
   0xc   :  { %v282_v14 = vadd.f32 %v281_v4, %v280_v7  ;;  %v227_v2 = vmul.f32 %v543_v37, %v543_v37  ;;  %v700_v37 = vld [vmem:[%s1036_s0 + $0xf8] sm:$0xff] }
   0xd   :  { %v93_v23 = vadd.f32 %v92_v18, %v91_v20  ;;  %v285_v18 = vsel %vm80_vm1, %v218_v0, 0.0 }
   0xf   :  { %v95_v26 = vadd.f32 %v94_v21, %v93_v23  ;;  %v284_v21 = vadd.f32 %v283_v10, %v282_v14  ;;  %v126_v23 = vsel %vm80_vm1, %v620_v13, 0.0  ;;  %v142_v14 = vsel %vm80_vm1, %v700_v37, 0.0 }
  0x11   :  { %v97_v29 = vadd.f32 %v96_v24, %v95_v26  ;;  %v221_v24 = vmul.f32 %v501_v19, %v501_v19  ;;  %v287_v26 = vsel %vm80_vm1, %v219_v9, 0.0  ;;  %v640_v19 = vld [vmem:[%s1036_s0 + $0xc8] sm:$0xff] }
  0x13   :  { %v99_v32 = vadd.f32 %v98_v27, %v97_v29  ;;  %v286_v29 = vadd.f32 %v285_v18, %v284_v21 }
  0x15   :  { %v101_v35 = vadd.f32 %v100_v30, %v99_v32  ;;  %v128_v30 = vsel %vm80_vm1, %v630_v16, 0.0  ;;  %v222_v32 = vmul.f32 %v508_v22, %v508_v22  ;;  %v650_v22 = vld [vmem:[%s1036_s0 + $0xd0] sm:$0xff] }
  0x17   :  { %v103_v38 = vadd.f32 %v102_v33, %v101_v35  ;;  %v289_v33 = vsel %vm80_vm1, %v220_v17, 0.0  ;;  %v303_v17 = vsel %vm80_vm1, %v227_v2, 0.0 }
  0x19   :  { %v105_v41 = vadd.f32 %v104_v36, %v103_v38  ;;  %v288_v36 = vadd.f32 %v287_v26, %v286_v29  ;;  %v130_v38 = vsel %vm80_vm1, %v640_v19, 0.0 }
  0x1b   :  { %v107_v44 = vadd.f32 %v106_v39, %v105_v41  ;;  %v223_v39 = vmul.f32 %v515_v25, %v515_v25  ;;  %v291_v41 = vsel %vm80_vm1, %v221_v24, 0.0  ;;  %v660_v25 = vld [vmem:[%s1036_s0 + $0xd8] sm:$0xff] }
  0x1d   :  { %v109_v47 = vadd.f32 %v108_v42, %v107_v44  ;;  %v290_v44 = vadd.f32 %v289_v33, %v288_v36  ;;  %v295_v55 = vsel %vm80_vm1, %v223_v39, 0.0 }
  0x1f   :  { %v111_v50 = vadd.f32 %v110_v45, %v109_v47  ;;  %v132_v45 = vsel %vm80_vm1, %v650_v22, 0.0  ;;  %v224_v47 = vmul.f32 %v522_v28, %v522_v28  ;;  %v670_v28 = vld [vmem:[%s1036_s0 + $0xe0] sm:$0xff] }
  0x21   :  { %v113_v53 = vadd.f32 %v112_v48, %v111_v50  ;;  %v293_v48 = vsel %vm80_vm1, %v222_v32, 0.0  ;;  %v297_v61 = vsel %vm80_vm1, %v224_v47, 0.0 }
  0x23   :  { %v115_v59 = vadd.f32 %v114_v51, %v113_v53  ;;  %v292_v51 = vadd.f32 %v291_v41, %v290_v44  ;;  %v134_v53 = vsel %vm80_vm1, %v660_v25, 0.0 }
  0x25   :  { %v117_v63 = vadd.f32 %v116_v54, %v115_v59  ;;  %v225_v54 = vmul.f32 %v529_v31, %v529_v31  ;;  %v294_v57 = vadd.f32 %v293_v48, %v292_v51  ;;  %v136_v59 = vsel %vm80_vm1, %v670_v28, 0.0  ;;  %v680_v31 = vld [vmem:[%s1036_s0 + $0xe8] sm:$0xff] }
  0x27   :  { %v119_v6 = vadd.f32 %v118_v60, %v117_v63  ;;  %v226_v60 = vmul.f32 %v536_v34, %v536_v34  ;;  %v296_v0 = vadd.f32 %v295_v55, %v294_v57  ;;  %v299_v3 = vsel %vm80_vm1, %v225_v54, 0.0  ;;  %v690_v34 = vld [vmem:[%s1036_s0 + $0xf0] sm:$0xff] }
  0x28   :  { %v140_v7 = vsel %vm80_vm1, %v690_v34, 0.0 }
  0x29   :  { %v121_v12 = vadd.f32 %v120_v1, %v119_v6  ;;  %v138_v1 = vsel %vm80_vm1, %v680_v31, 0.0  ;;  %v298_v6 = vadd.f32 %v297_v61, %v296_v0  ;;  %v301_v9 = vsel %vm80_vm1, %v226_v60, 0.0 }
  0x2b   :  { %v123_v20 = vadd.f32 %v122_v8, %v121_v12  ;;  %v228_v8 = vmul.f32 %v550_v40, %v550_v40  ;;  %v300_v12 = vadd.f32 %v299_v3, %v298_v6  ;;  %v710_v40 = vld [vmem:[%s1036_s0 + $0x100] sm:$0xff] }
  0x2c   :  { %v144_v21 = vsel %vm80_vm1, %v710_v40, 0.0 }
  0x2d   :  { %v125_v27 = vadd.f32 %v124_v15, %v123_v20  ;;  %v229_v15 = vmul.f32 %v557_v43, %v557_v43  ;;  %v302_v20 = vadd.f32 %v301_v9, %v300_v12  ;;  %v305_v24 = vsel %vm80_vm1, %v228_v8, 0.0  ;;  %v720_v43 = vld [vmem:[%s1036_s0 + $0x108] sm:$0xff] }
  0x2e   :  { %v146_v29 = vsel %vm80_vm1, %v720_v43, 0.0 }
  0x2f   :  { %v127_v35 = vadd.f32 %v126_v23, %v125_v27  ;;  %v230_v23 = vmul.f32 %v564_v46, %v564_v46  ;;  %v304_v27 = vadd.f32 %v303_v17, %v302_v20  ;;  %v307_v32 = vsel %vm80_vm1, %v229_v15, 0.0  ;;  %v730_v46 = vld [vmem:[%s1036_s0 + $0x110] sm:$0xff] }
  0x30   :  { %v148_v36 = vsel %vm80_vm1, %v730_v46, 0.0 }
  0x31   :  { %v129_v42 = vadd.f32 %v128_v30, %v127_v35  ;;  %v231_v30 = vmul.f32 %v571_v49, %v571_v49  ;;  %v306_v35 = vadd.f32 %v305_v24, %v304_v27  ;;  %v309_v39 = vsel %vm80_vm1, %v230_v23, 0.0  ;;  %v740_v49 = vld [vmem:[%s1036_s0 + $0x118] sm:$0xff] }
  0x32   :  { %v150_v44 = vsel %vm80_vm1, %v740_v49, 0.0 }
  0x33   :  { %v131_v50 = vadd.f32 %v130_v38, %v129_v42  ;;  %v232_v38 = vmul.f32 %v578_v52, %v578_v52  ;;  %v308_v42 = vadd.f32 %v307_v32, %v306_v35  ;;  %v311_v47 = vsel %vm80_vm1, %v231_v30, 0.0  ;;  %v750_v52 = vld [vmem:[%s1036_s0 + $0x120] sm:$0xff] }
  0x34   :  { %v152_v51 = vsel %vm80_vm1, %v750_v52, 0.0 }
  0x35   :  { %v133_v56 = vadd.f32 %v132_v45, %v131_v50  ;;  %v233_v45 = vmul.f32 %v585_v58, %v585_v58  ;;  %v310_v50 = vadd.f32 %v309_v39, %v308_v42  ;;  %v313_v54 = vsel %vm80_vm1, %v232_v38, 0.0  ;;  %v760_v58 = vld [vmem:[%s1036_s0 + $0x128] sm:$0xff] }
  0x36   :  { %v154_v57 = vsel %vm80_vm1, %v760_v58, 0.0 }
  0x37   :  { %v135_v63 = vadd.f32 %v134_v53, %v133_v56  ;;  %v234_v53 = vmul.f32 %v592_v62, %v592_v62  ;;  %v312_v56 = vadd.f32 %v311_v47, %v310_v50  ;;  %v315_v60 = vsel %vm80_vm1, %v233_v45, 0.0  ;;  %v770_v62 = vld [vmem:[%s1036_s0 + $0x130] sm:$0xff] }
  0x38   :  { %v156_v0 = vsel %vm80_vm1, %v770_v62, 0.0 }
  0x39   :  { %v137_v4 = vadd.f32 %v136_v59, %v135_v63  ;;  %v235_v59 = vmul.f32 %v602_v5, %v602_v5  ;;  %v314_v63 = vadd.f32 %v313_v54, %v312_v56  ;;  %v317_v2 = vsel %vm80_vm1, %v234_v53, 0.0  ;;  %v780_v5 = vld [vmem:[%s1036_s0 + $0x138] sm:$0xff] }
  0x3a   :  { %v158_v6 = vsel %vm80_vm1, %v780_v5, 0.0 }
  0x3b   :  { %v139_v10 = vadd.f32 %v138_v1, %v137_v4  ;;  %v236_v1 = vmul.f32 %v610_v11, %v610_v11  ;;  %v316_v4 = vadd.f32 %v315_v60, %v314_v63  ;;  %v319_v8 = vsel %vm80_vm1, %v235_v59, 0.0  ;;  %v790_v11 = vld [vmem:[%s1036_s0 + $0x140] sm:$0xff] }
  0x3c   :  { %v160_v12 = vsel %vm80_vm1, %v790_v11, 0.0 }
  0x3d   :  { %v141_v18 = vadd.f32 %v140_v7, %v139_v10  ;;  %v237_v7 = vmul.f32 %v620_v13, %v620_v13  ;;  %v318_v10 = vadd.f32 %v317_v2, %v316_v4  ;;  %v321_v15 = vsel %vm80_vm1, %v236_v1, 0.0  ;;  %v800_v13 = vld [vmem:[%s1036_s0 + $0x148] sm:$0xff] }
  0x3e   :  { %v162_v20 = vsel %vm80_vm1, %v800_v13, 0.0 }
  0x3f   :  { %v143_v26 = vadd.f32 %v142_v14, %v141_v18  ;;  %v238_v14 = vmul.f32 %v630_v16, %v630_v16  ;;  %v320_v18 = vadd.f32 %v319_v8, %v318_v10  ;;  %v323_v23 = vsel %vm80_vm1, %v237_v7, 0.0  ;;  %v810_v16 = vld [vmem:[%s1036_s0 + $0x150] sm:$0xff] }
  0x40   :  { %v164_v27 = vsel %vm80_vm1, %v810_v16, 0.0 }
  0x41   :  { %v145_v33 = vadd.f32 %v144_v21, %v143_v26  ;;  %v239_v21 = vmul.f32 %v640_v19, %v640_v19  ;;  %v322_v26 = vadd.f32 %v321_v15, %v320_v18  ;;  %v325_v30 = vsel %vm80_vm1, %v238_v14, 0.0  ;;  %v820_v19 = vld [vmem:[%s1036_s0 + $0x158] sm:$0xff] }
  0x42   :  { %v166_v35 = vsel %vm80_vm1, %v820_v19, 0.0 }
  0x43   :  { %v147_v41 = vadd.f32 %v146_v29, %v145_v33  ;;  %v240_v29 = vmul.f32 %v650_v22, %v650_v22  ;;  %v324_v33 = vadd.f32 %v323_v23, %v322_v26  ;;  %v327_v38 = vsel %vm80_vm1, %v239_v21, 0.0  ;;  %v830_v22 = vld [vmem:[%s1036_s0 + $0x160] sm:$0xff] }
  0x44   :  { %v168_v42 = vsel %vm80_vm1, %v830_v22, 0.0 }
  0x45   :  { %v149_v48 = vadd.f32 %v148_v36, %v147_v41  ;;  %v241_v36 = vmul.f32 %v660_v25, %v660_v25  ;;  %v326_v41 = vadd.f32 %v325_v30, %v324_v33  ;;  %v329_v45 = vsel %vm80_vm1, %v240_v29, 0.0  ;;  %v840_v25 = vld [vmem:[%s1036_s0 + $0x168] sm:$0xff] }
  0x46   :  { %v170_v50 = vsel %vm80_vm1, %v840_v25, 0.0 }
  0x47   :  { %v151_v55 = vadd.f32 %v150_v44, %v149_v48  ;;  %v242_v44 = vmul.f32 %v670_v28, %v670_v28  ;;  %v328_v48 = vadd.f32 %v327_v38, %v326_v41  ;;  %v331_v53 = vsel %vm80_vm1, %v241_v36, 0.0  ;;  %v850_v28 = vld [vmem:[%s1036_s0 + $0x170] sm:$0xff] }
  0x48   :  { %v172_v56 = vsel %vm80_vm1, %v850_v28, 0.0 }
  0x49   :  { %v153_v61 = vadd.f32 %v152_v51, %v151_v55  ;;  %v243_v51 = vmul.f32 %v680_v31, %v680_v31  ;;  %v330_v55 = vadd.f32 %v329_v45, %v328_v48  ;;  %v333_v59 = vsel %vm80_vm1, %v242_v44, 0.0  ;;  %v860_v31 = vld [vmem:[%s1036_s0 + $0x178] sm:$0xff] }
  0x4a   :  { %v174_v63 = vsel %vm80_vm1, %v860_v31, 0.0 }
  0x4b   :  { %v155_v3 = vadd.f32 %v154_v57, %v153_v61  ;;  %v244_v57 = vmul.f32 %v690_v34, %v690_v34  ;;  %v332_v61 = vadd.f32 %v331_v53, %v330_v55  ;;  %v335_v1 = vsel %vm80_vm1, %v243_v51, 0.0  ;;  %v870_v34 = vld [vmem:[%s1036_s0 + $0x180] sm:$0xff]  ;;  %v936_v53 = vld [vmem:[%s1036_s0 + $0x1b0] sm:$0xff] }
  0x4c   :  { %v176_v4 = vsel %vm80_vm1, %v870_v34, 0.0 }
  0x4d   :  { %v157_v9 = vadd.f32 %v156_v0, %v155_v3  ;;  %v245_v0 = vmul.f32 %v700_v37, %v700_v37  ;;  %v334_v3 = vadd.f32 %v333_v59, %v332_v61  ;;  %v337_v7 = vsel %vm80_vm1, %v244_v57, 0.0  ;;  %v880_v37 = vld [vmem:[%s1036_s0 + $0x188] sm:$0xff]  ;;  %v70_v61 = vld [vmem:[%s1036_s0 + $0x1b8] sm:$0xff] }
  0x4e   :  { %v178_v10 = vsel %vm80_vm1, %v880_v37, 0.0 }
  0x4f   :  { %v159_v17 = vadd.f32 %v158_v6, %v157_v9  ;;  %v246_v6 = vmul.f32 %v710_v40, %v710_v40  ;;  %v336_v9 = vadd.f32 %v335_v1, %v334_v3  ;;  %v339_v14 = vsel %vm80_vm1, %v245_v0, 0.0  ;;  %v890_v40 = vld [vmem:[%s1036_s0 + $0x190] sm:$0xff] }
  0x50   :  { %v180_v18 = vsel %vm80_vm1, %v890_v40, 0.0  ;;  %v190_v1 = vsel %vm80_vm1, %v70_v61, 0.0 }
  0x51   :  { %v161_v24 = vadd.f32 %v160_v12, %v159_v17  ;;  %v247_v12 = vmul.f32 %v720_v43, %v720_v43  ;;  %v338_v17 = vadd.f32 %v337_v7, %v336_v9  ;;  %v341_v21 = vsel %vm80_vm1, %v246_v6, 0.0  ;;  %v900_v43 = vld [vmem:[%s1036_s0 + $0x198] sm:$0xff]  ;;  %v71_v6 = vld [vmem:[%s1036_s0 + $0x1c0] sm:$0xff] }
  0x52   :  { %v182_v26 = vsel %vm80_vm1, %v900_v43, 0.0  ;;  %v192_v9 = vsel %vm80_vm1, %v71_v6, 0.0 }
  0x53   :  { %v163_v32 = vadd.f32 %v162_v20, %v161_v24  ;;  %v248_v20 = vmul.f32 %v730_v46, %v730_v46  ;;  %v340_v24 = vadd.f32 %v339_v14, %v338_v17  ;;  %v343_v29 = vsel %vm80_vm1, %v247_v12, 0.0  ;;  %v910_v46 = vld [vmem:[%s1036_s0 + $0x1a0] sm:$0xff] }
  0x54   :  { %v184_v33 = vsel %vm80_vm1, %v910_v46, 0.0  ;;  %v259_v14 = vmul.f32 %v840_v25, %v840_v25 }
  0x55   :  { %v165_v39 = vadd.f32 %v164_v27, %v163_v32  ;;  %v249_v27 = vmul.f32 %v740_v49, %v740_v49  ;;  %v342_v32 = vadd.f32 %v341_v21, %v340_v24  ;;  %v345_v36 = vsel %vm80_vm1, %v248_v20, 0.0 }
  0x56   :  { %v251_v49 = vmul.f32 %v760_v58, %v760_v58  ;;  %v253_v58 = vmul.f32 %v780_v5, %v780_v5  ;;  %v255_v5 = vmul.f32 %v800_v13, %v800_v13  ;;  %v260_v21 = vmul.f32 %v850_v28, %v850_v28 }
  0x57   :  { %v167_v47 = vadd.f32 %v166_v35, %v165_v39  ;;  %v250_v35 = vmul.f32 %v750_v52, %v750_v52  ;;  %v344_v39 = vadd.f32 %v343_v29, %v342_v32  ;;  %v347_v41 = vsel %vm80_vm1, %v249_v27, 0.0 }
  0x58   :  { %v252_v52 = vmul.f32 %v770_v62, %v770_v62  ;;  %v351_v51 = vsel %vm80_vm1, %v251_v49, 0.0  ;;  %v254_v62 = vmul.f32 %v790_v11, %v790_v11  ;;  %v359_v13 = vsel %vm80_vm1, %v255_v5, 0.0 }
  0x59   :  { %v169_v54 = vadd.f32 %v168_v42, %v167_v47  ;;  %v923_v42 = vld [vmem:[%s1036_s0 + $0x1a8] sm:$0xff]  ;;  %v346_v45 = vadd.f32 %v345_v36, %v344_v39  ;;  %v349_v48 = vsel %vm80_vm1, %v250_v35, 0.0  ;;  %v261_v24 = vmul.f32 %v860_v31, %v860_v31  ;;  %v74_v36 = vld [vmem:[%s1036_s0 + $0x1d8] sm:$0xff] }
  0x5a   :  { %v186_v47 = vsel %vm80_vm1, %v923_v42, 0.0  ;;  %v353_v57 = vsel %vm80_vm1, %v252_v52, 0.0  ;;  %v357_v11 = vsel %vm80_vm1, %v254_v62, 0.0  ;;  %v367_v25 = vsel %vm80_vm1, %v259_v14, 0.0 }
  0x5b   :  { %v171_v60 = vadd.f32 %v170_v50, %v169_v54  ;;  %v348_v50 = vadd.f32 %v347_v41, %v346_v45  ;;  %v262_v32 = vmul.f32 %v870_v34, %v870_v34  ;;  %v369_v28 = vsel %vm80_vm1, %v260_v21, 0.0 }
  0x5c   :  { %v263_v35 = vmul.f32 %v880_v37, %v880_v37  ;;  %v371_v31 = vsel %vm80_vm1, %v261_v24, 0.0  ;;  %v198_v49 = vsel %vm80_vm1, %v74_v36, 0.0  ;;  %v264_v41 = vmul.f32 %v890_v40, %v890_v40 }
  0x5d   :  { %v173_v2 = vadd.f32 %v172_v56, %v171_v60  ;;  %v350_v55 = vadd.f32 %v349_v48, %v348_v50  ;;  %v188_v56 = vsel %vm80_vm1, %v936_v53, 0.0  ;;  %v355_v60 = vsel %vm80_vm1, %v253_v58, 0.0 }
  0x5e   :  { %v373_v34 = vsel %vm80_vm1, %v262_v32, 0.0  ;;  %v265_v45 = vmul.f32 %v900_v43, %v900_v43  ;;  %v375_v37 = vsel %vm80_vm1, %v263_v35, 0.0  ;;  %v266_v58 = vmul.f32 %v910_v46, %v910_v46 }
  0x5f   :  { %v175_v8 = vadd.f32 %v174_v63, %v173_v2  ;;  %v352_v59 = vadd.f32 %v351_v51, %v350_v55  ;;  %v256_v2 = vmul.f32 %v810_v16, %v810_v16  ;;  %v377_v40 = vsel %vm80_vm1, %v264_v41, 0.0  ;;  %v76_v55 = vld [vmem:[%s1036_s0 + $0x1e8] sm:$0xff] }
  0x60   :  { %v379_v43 = vsel %vm80_vm1, %v265_v45, 0.0  ;;  %v381_v46 = vsel %vm80_vm1, %v266_v58, 0.0  ;;  %v273_v14 = vmul.f32 %v74_v36, %v74_v36  ;;  %v275_v21 = vmul.f32 %v76_v55, %v76_v55 }
  0x61   :  { %v177_v15 = vadd.f32 %v176_v4, %v175_v8  ;;  %v354_v0 = vadd.f32 %v353_v57, %v352_v59  ;;  %v257_v4 = vmul.f32 %v820_v19, %v820_v19  ;;  %v361_v16 = vsel %vm80_vm1, %v256_v2, 0.0 }
  0x62   :  { %v202_v57 = vsel %vm80_vm1, %v76_v55, 0.0  ;;  %v268_v59 = vmul.f32 %v936_v53, %v936_v53 }
  0x63   :  { %v179_v23 = vadd.f32 %v178_v10, %v177_v15  ;;  %v356_v3 = vadd.f32 %v355_v60, %v354_v0  ;;  %v258_v10 = vmul.f32 %v830_v22, %v830_v22  ;;  %v363_v19 = vsel %vm80_vm1, %v257_v4, 0.0  ;;  %v72_v15 = vld [vmem:[%s1036_s0 + $0x1c8] sm:$0xff] }
  0x64   :  { %v194_v20 = vsel %vm80_vm1, %v72_v15, 0.0  ;;  %v269_v60 = vmul.f32 %v70_v61, %v70_v61  ;;  %v78_v61 = vld [vmem:[%s1036_s0 + $0x1f8] sm:$0xff] }
  0x65   :  { %v181_v30 = vadd.f32 %v180_v18, %v179_v23  ;;  %v358_v8 = vadd.f32 %v357_v11, %v356_v3  ;;  %v365_v22 = vsel %vm80_vm1, %v258_v10, 0.0  ;;  %v270_v11 = vmul.f32 %v71_v6, %v71_v6 }
  0x66   :  { %v385_v3 = vsel %vm80_vm1, %v268_v59, 0.0  ;;  %v387_v53 = vsel %vm80_vm1, %v269_v60, 0.0 }
  0x67   :  { %v183_v38 = vadd.f32 %v182_v26, %v181_v30  ;;  %v360_v12 = vadd.f32 %v359_v13, %v358_v8  ;;  %v73_v26 = vld [vmem:[%s1036_s0 + $0x1d0] sm:$0xff]  ;;  %v271_v13 = vmul.f32 %v72_v15, %v72_v15 }
  0x68   :  { %v196_v30 = vsel %vm80_vm1, %v73_v26, 0.0  ;;  %v272_v10 = vmul.f32 %v73_v26, %v73_v26 }
  0x69   :  { %v185_v44 = vadd.f32 %v184_v33, %v183_v38  ;;  %v362_v18 = vadd.f32 %v361_v16, %v360_v12  ;;  %v389_v16 = vsel %vm80_vm1, %v270_v11, 0.0  ;;  %v391_v6 = vsel %vm80_vm1, %v271_v13, 0.0 }
  0x6b   :  { %v187_v54 = vadd.f32 %v186_v47, %v185_v44  ;;  %v364_v23 = vadd.f32 %v363_v19, %v362_v18  ;;  %v75_v47 = vld [vmem:[%s1036_s0 + $0x1e0] sm:$0xff]  ;;  %v393_v18 = vsel %vm80_vm1, %v272_v10, 0.0 }
  0x6c   :  { %v200_v50 = vsel %vm80_vm1, %v75_v47, 0.0  ;;  %v274_v15 = vmul.f32 %v75_v47, %v75_v47 }
  0x6d   :  { %v189_v63 = vadd.f32 %v188_v56, %v187_v54  ;;  %v366_v29 = vadd.f32 %v365_v22, %v364_v23  ;;  %v267_v54 = vmul.f32 %v923_v42, %v923_v42  ;;  %v77_v42 = vld [vmem:[%s1036_s0 + $0x1f0] sm:$0xff]  ;;  %v395_v22 = vsel %vm80_vm1, %v273_v14, 0.0  ;;  %s455_s0 = smov [#allocation2]  }
  0x6e   :  { %v204_v2 = vsel %vm80_vm1, %v77_v42, 0.0  ;;  %v397_v26 = vsel %vm80_vm1, %v274_v15, 0.0  ;;  %s422_s18 = sshll.u32 %s455_s0, 4  ;;  %s423_s18 = int_to_ptr.vmem [resolvable:$true] %s422_s18 }
  0x6f   :  { %v191_v7 = vadd.f32 %v190_v1, %v189_v63  ;;  %v368_v33 = vadd.f32 %v367_v25, %v366_v29  ;;  %v383_v63 = vsel %vm80_vm1, %v267_v54, 0.0  ;;  %v276_v25 = vmul.f32 %v77_v42, %v77_v42  ;;  %s432_s19 = scalar_lea.vmem %s423_s18, 32  ;;  %p437_p1 = scmp.lt.s32.totalorder %s423_s18, %s423_s18 }
  0x70   :  { %v277_v29 = vmul.f32 %v78_v61, %v78_v61  ;;  %p433_p0 = scmp.ne.s32.totalorder %s423_s18, %s432_s19  ;;  %p438_p2 = scmp.lt.s32.totalorder %s432_s19, %s432_s19 }
  0x71   :  { %v193_v17 = vadd.f32 %v192_v9, %v191_v7  ;;  %v370_v39 = vadd.f32 %v369_v28, %v368_v33  ;;  %v206_v9 = vsel %vm80_vm1, %v78_v61, 0.0  ;;  %v401_v33 = vsel %vm80_vm1, %v276_v25, 0.0 }
  0x72   :  { %p439_p3 = por %p438_p2, %p437_p1 }
  0x73   :  { %v195_v27 = vadd.f32 %v194_v20, %v193_v17  ;;  %v372_v44 = vadd.f32 %v371_v31, %v370_v39  ;;  %v403_v31 = vsel %vm80_vm1, %v277_v29, 0.0 }
  0x74   :  { %p440_p4 = pnand %p439_p3, %p433_p0 }
  0x75   :  { %v197_v38 = vadd.f32 %v196_v30, %v195_v27  ;;  %v374_v48 = vadd.f32 %v373_v34, %v372_v44  ;;  %v399_v30 = vsel %vm80_vm1, %v275_v21, 0.0 }
  0x77   :  { %v199_v52 = vadd.f32 %v198_v49, %v197_v38  ;;  %v376_v51 = vadd.f32 %v375_v37, %v374_v48  ;;  %v79_v48 = vld [vmem:[#allocation2] sm:$0x3] }
  0x79   :  { %v201_v56 = vadd.f32 %v200_v50, %v199_v52  ;;  %v378_v62 = vadd.f32 %v377_v40, %v376_v51 }
  0x7b   :  { %v380_v5 = vadd.f32 %v379_v43, %v378_v62  ;;  %v203_v0 = vadd.f32 %v202_v57, %v201_v56 }
  0x7d   :  { %v382_v1 = vadd.f32 %v381_v46, %v380_v5  ;;  %v205_v7 = vadd.f32 %v204_v2, %v203_v0 }
  0x7f   :  { %v384_v4 = vadd.f32 %v383_v63, %v382_v1  ;;  %v207_v19 = vadd.f32 %v206_v9, %v205_v7 }
  0x81   :  { %v386_v8 = vadd.f32 %v385_v3, %v384_v4  ;;  %v208_v23 = vrot.slane %v207_v19, 4 }
  0x83   :  { %v388_v12 = vadd.f32 %v387_v53, %v386_v8  ;;  %v209_v32 = vadd.f32 %v208_v23, %v207_v19 }
  0x85   :  { %v390_v17 = vadd.f32 %v389_v16, %v388_v12  ;;  %v210_v36 = vrot.slane %v209_v32, 2 }
  0x87   :  { %v392_v20 = vadd.f32 %v391_v6, %v390_v17  ;;  %v211_v49 = vadd.f32 %v210_v36, %v209_v32 }
  0x89   :  { %v394_v24 = vadd.f32 %v393_v18, %v392_v20  ;;  %v212_v44 = vrot.slane %v211_v49, 1 }
  0x8b   :  { %v396_v27 = vadd.f32 %v395_v22, %v394_v24  ;;  %v213_v47 = vadd.f32 %v212_v44, %v211_v49 }
  0x8d   :  { %v398_v28 = vadd.f32 %v397_v26, %v396_v27 }
  0x8f   :  { %v400_v35 = vadd.f32 %v399_v30, %v398_v28 }
  0x91   :  { %v402_v38 = vadd.f32 %v401_v33, %v400_v35 }
  0x93   :  { %v404_v39 = vadd.f32 %v403_v31, %v402_v38 }
  0x95   :  { %v405_v41 = vrot.slane %v404_v39, 4 }
  0x97   :  { %v406_v34 = vadd.f32 %v405_v41, %v404_v39 }
  0x99   :  { %v407_v45 = vrot.slane %v406_v34, 2 }
  0x9b   :  { %v408_v37 = vadd.f32 %v407_v45, %v406_v34 }
  0x9d   :  { %v409_v52 = vrot.slane %v408_v37, 1 }
  0x9f   :  { %v410_v50 = vadd.f32 %v409_v52, %v408_v37 }
  0xa1   :  { %v412_v58 = vsel %vm411_vm2, %v213_v47, %v410_v50 }
  0xa2   :  { %v413_v40 = vadd.f32 %v412_v58, %v79_v48 }
  0xa4   :  { %415 = vst.msk [vmem:[#allocation2] sm:$0x3] %vm13_vm0, %v413_v40 }
  0xa5   :  { %443 = shalt.err (!%p440_p4)
}
  0xa6   :  { %425 = dma.vmem_to_hbm [thread:$0]  %s423_s18, 32, %s1037_s1, [#allocation3]  }
  0xa7   :  { %452 = dma.done.wait [#allocation3], 32  }
  0xa8   :  { %453 = vsyncadd [#allocation3], 4294967264 }
  0xa9   :  { %429 = vsyncpa [#allocation3], 1 }

</bundles_post_ra>
